<compile_context>
chip_gen: v7x
topology: tpu7x:2x2x1
jax: 0.10.0
libtpu: 0.0.40
codegen_flags: <defaults>
</compile_context>

<pallas_src>
import jax
import jax.numpy as jnp
from jax.experimental import pallas as pl
from jax.experimental.pallas import tpu as pltpu

_LANE = 128
_MAX_TILE = 2048          # rows per grid step (big tiles amortize step overhead)
_PAD_OUTPUT_MAX_B = 4096  # beyond this, padded-output HBM traffic outweighs vst.msk


def _actor_kernel(x_ref, w1_ref, b1_ref, w2_ref, b2_ref, w3_ref, b3_ref, out_ref):
    """One batch-tile of the actor MLP, fully fused in VMEM."""
    x = x_ref[...]
    h = jnp.dot(x, w1_ref[...], preferred_element_type=jnp.float32) + b1_ref[...]
    h = jnp.maximum(h, 0.0)
    h = jnp.dot(h, w2_ref[...], preferred_element_type=jnp.float32) + b2_ref[...]
    h = jnp.maximum(h, 0.0)
    out_ref[...] = (
        jnp.dot(h, w3_ref[...], preferred_element_type=jnp.float32) + b3_ref[...]
    )


def prepare_actor_params(params):
    """One-time parameter prep: pre-pad the last layer to a lane-dense width
    (multiple of 128) so the forward path does no per-call padding work.
    Call once after init / after every parameter update."""
    H, A = params["w3"].shape
    A_pad = ((A + _LANE - 1) // _LANE) * _LANE
    prepared = dict(params)
    prepared["action_dim"] = A
    prepared["w3_pad"] = jnp.zeros((H, A_pad), jnp.float32).at[:, :A].set(params["w3"])
    prepared["b3_pad"] = jnp.zeros((1, A_pad), jnp.float32).at[:, :A].set(params["b3"])
    return prepared


def _pick_batch_tile(B):
    # Single grid step whenever the whole batch fits a comfortable tile: the
    # grid is a sequential loop on v5e/v6e (1 TC), so extra steps are pure
    # fixed overhead on this latency-bound microkernel.
    if B <= _MAX_TILE:
        return B
    # Large batch: biggest tile <= _MAX_TILE that divides B and respects the
    # sublane constraint (tile % 8 == 0).  This yields >=2 grid steps, letting
    # v7x's 2 TensorCores split the "parallel" grid axis.
    # TODO(synk): profile on v7x to confirm dimension_semantics=("parallel",)
    # actually shards the 1-D grid across both TCs; otherwise use core_map.
    for steps in range(pl.cdiv(B, _MAX_TILE), B + 1):
        tile = B // steps
        if B % steps == 0 and tile % 8 == 0:
            return tile
    return B  # fallback: one big step (block dim == full array dim is always legal)


def discrete_actor_forward(state, prepared, *, batch_tile=None):
    """state: (B, state_dim) f32. prepared: output of prepare_actor_params().
    Returns logits (B, A)."""
    B, S = state.shape
    A = prepared["action_dim"]

    if batch_tile is None:
        batch_tile = _pick_batch_tile(B)
    assert B % batch_tile == 0, "batch must be divisible by batch_tile"
    grid = (B // batch_tile,)

    # Output layout choice: lane-dense padding (A -> 128) avoids masked
    # vst.msk partial stores but writes 128/A times the real bytes to HBM;
    # only worth it while total padded output stays small.  For large B emit
    # the un-padded (tile, A) output (legal: last block dim == full array dim).
    pad_output = (A % _LANE != 0) and (B <= _PAD_OUTPUT_MAX_B)
    if pad_output:
        w3, b3 = prepared["w3_pad"], prepared["b3_pad"]
    else:
        w3, b3 = prepared["w3"], prepared["b3"]
    A_out = w3.shape[1]

    def full_spec(shape):
        # Weights/biases: replicate the full tensor to every grid step
        # (constant block index -> no per-step re-DMA).
        return pl.BlockSpec(shape, lambda i: (0,) * len(shape))

    in_specs = [
        pl.BlockSpec((batch_tile, S), lambda i: (i, 0)),
        full_spec(prepared["w1"].shape), full_spec(prepared["b1"].shape),
        full_spec(prepared["w2"].shape), full_spec(prepared["b2"].shape),
        full_spec(w3.shape), full_spec(b3.shape),
    ]
    out_spec = pl.BlockSpec((batch_tile, A_out), lambda i: (i, 0))

    logits = pl.pallas_call(
        _actor_kernel,
        out_shape=jax.ShapeDtypeStruct((B, A_out), jnp.float32),
        grid_spec=pltpu.PrefetchScalarGridSpec(
            num_scalar_prefetch=0,
            grid=grid,
            in_specs=in_specs,
            out_specs=out_spec,
        ),
        compiler_params=pltpu.CompilerParams(
            dimension_semantics=("parallel",),
        ),
    )(state,
      prepared["w1"], prepared["b1"],
      prepared["w2"], prepared["b2"],
      w3, b3)

    if pad_output and A_out != A:
        # Padding columns are exact zeros (zero weights + zero bias).
        logits = logits[:, :A]
    return logits


def init_params(key, state_dim, action_dim, hidden_dim):
    """Deterministic synthetic init (uniform, PyTorch-Linear-like fan-in scaling)."""
    def linear(k, fan_in, fan_out):
        kw, kb = jax.random.split(k)
        bound = 1.0 / jnp.sqrt(fan_in)
        w = jax.random.uniform(kw, (fan_in, fan_out), jnp.float32, -bound, bound)
        b = jax.random.uniform(kb, (1, fan_out), jnp.float32, -bound, bound)
        return w, b

    keys = jax.random.split(key, 3)
    p = {}
    p["w1"], p["b1"] = linear(keys[0], state_dim, hidden_dim)
    p["w2"], p["b2"] = linear(keys[1], hidden_dim, hidden_dim)
    p["w3"], p["b3"] = linear(keys[2], hidden_dim, action_dim)
    return p


def reference_forward(state, p):
    """Plain-JAX reference of the PyTorch DiscreteActor.forward."""
    h = jnp.maximum(state @ p["w1"] + p["b1"], 0.0)
    h = jnp.maximum(h @ p["w2"] + p["b2"], 0.0)
    return h @ p["w3"] + p["b3"]


if __name__ == "__main__":
    # Small shapes consistent with DiscreteActor(state_dim, action_dim, hidden_dim).
    batch, state_dim, action_dim, hidden_dim = 256, 16, 4, 32

    key = jax.random.PRNGKey(0)
    k_params, k_state = jax.random.split(key)
    params = init_params(k_params, state_dim, action_dim, hidden_dim)
    prepared = prepare_actor_params(params)  # one-time padding, hoisted out of forward
    state = jax.random.normal(k_state, (batch, state_dim), jnp.float32)

    logits = discrete_actor_forward(state, prepared)
    jax.block_until_ready(logits)

    # Sanity check against a plain-JAX reference (both go through the same
    # default MXU precision; pass precision=HIGHEST in both if exact fp32
    # parity with PyTorch is required).
    ref = reference_forward(state, params)
    assert logits.shape == (batch, action_dim)
    assert jnp.allclose(logits, ref, atol=1e-5, rtol=1e-5)

    # TODO(synk): DiscreteActor.sample (Categorical sampling / log_prob / probs)
    # is host-side distribution logic, left outside the kernel.

    print("KERNEL_OK")
</pallas_src>

<mosaic_0001>
module attributes {stable_mosaic.version = 11 : i64} {
  func.func @_actor_kernel(%arg0: i32, %arg1: memref<256x16xf32, #tpu.memory_space<vmem>>, %arg2: memref<16x32xf32, #tpu.memory_space<vmem>>, %arg3: memref<1x32xf32, #tpu.memory_space<vmem>>, %arg4: memref<32x32xf32, #tpu.memory_space<vmem>>, %arg5: memref<1x32xf32, #tpu.memory_space<vmem>>, %arg6: memref<32x128xf32, #tpu.memory_space<vmem>>, %arg7: memref<1x128xf32, #tpu.memory_space<vmem>>, %arg8: memref<256x128xf32, #tpu.memory_space<vmem>>) attributes {dimension_semantics = [#tpu.dimension_semantics<parallel>], iteration_bounds = array<i64: 1>, scalar_prefetch = 0 : i64, scratch_operands = 0 : i64, tpu.core_type = #tpu.core_type<tc>, window_params = [{transform_indices = @transform_0, window_bounds = array<i64: 256, 16>}, {pipeline_mode = #tpu.pipeline_mode<synchronous>, transform_indices = @transform_1, window_bounds = array<i64: 16, 32>}, {pipeline_mode = #tpu.pipeline_mode<synchronous>, transform_indices = @transform_2, window_bounds = array<i64: 1, 32>}, {pipeline_mode = #tpu.pipeline_mode<synchronous>, transform_indices = @transform_3, window_bounds = array<i64: 32, 32>}, {pipeline_mode = #tpu.pipeline_mode<synchronous>, transform_indices = @transform_4, window_bounds = array<i64: 1, 32>}, {pipeline_mode = #tpu.pipeline_mode<synchronous>, transform_indices = @transform_5, window_bounds = array<i64: 32, 128>}, {pipeline_mode = #tpu.pipeline_mode<synchronous>, transform_indices = @transform_6, window_bounds = array<i64: 1, 128>}, {transform_indices = @transform_7, window_bounds = array<i64: 256, 128>}]} {
    %c0 = arith.constant 0 : index
    %c0_0 = arith.constant 0 : index
    %0 = vector.load %arg1[%c0, %c0_0] : memref<256x16xf32, #tpu.memory_space<vmem>>, vector<256x16xf32>
    %c0_1 = arith.constant 0 : index
    %c0_2 = arith.constant 0 : index
    %1 = vector.load %arg2[%c0_1, %c0_2] : memref<16x32xf32, #tpu.memory_space<vmem>>, vector<16x32xf32>
    %cst = arith.constant dense<0.000000e+00> : vector<256x32xf32>
    %2 = tpu.matmul %0, %1, %cst {dimension_numbers = #tpu.dot_dimension_numbers<[1], [0], [0], [1], [0, 0, 1, 1], [], []>} : vector<256x16xf32>, vector<16x32xf32>, vector<256x32xf32> -> vector<256x32xf32>
    %c0_3 = arith.constant 0 : index
    %c0_4 = arith.constant 0 : index
    %3 = vector.load %arg3[%c0_3, %c0_4] : memref<1x32xf32, #tpu.memory_space<vmem>>, vector<1x32xf32>
    %4 = vector.broadcast %3 : vector<1x32xf32> to vector<256x32xf32>
    %5 = arith.addf %2, %4 : vector<256x32xf32>
    %cst_5 = arith.constant 0.000000e+00 : f32
    %6 = vector.broadcast %cst_5 : f32 to vector<256x32xf32>
    %7 = arith.maximumf %5, %6 : vector<256x32xf32>
    %c0_6 = arith.constant 0 : index
    %c0_7 = arith.constant 0 : index
    %8 = vector.load %arg4[%c0_6, %c0_7] : memref<32x32xf32, #tpu.memory_space<vmem>>, vector<32x32xf32>
    %cst_8 = arith.constant dense<0.000000e+00> : vector<256x32xf32>
    %9 = tpu.matmul %7, %8, %cst_8 {dimension_numbers = #tpu.dot_dimension_numbers<[1], [0], [0], [1], [0, 0, 1, 1], [], []>} : vector<256x32xf32>, vector<32x32xf32>, vector<256x32xf32> -> vector<256x32xf32>
    %c0_9 = arith.constant 0 : index
    %c0_10 = arith.constant 0 : index
    %10 = vector.load %arg5[%c0_9, %c0_10] : memref<1x32xf32, #tpu.memory_space<vmem>>, vector<1x32xf32>
    %11 = vector.broadcast %10 : vector<1x32xf32> to vector<256x32xf32>
    %12 = arith.addf %9, %11 : vector<256x32xf32>
    %cst_11 = arith.constant 0.000000e+00 : f32
    %13 = vector.broadcast %cst_11 : f32 to vector<256x32xf32>
    %14 = arith.maximumf %12, %13 : vector<256x32xf32>
    %c0_12 = arith.constant 0 : index
    %c0_13 = arith.constant 0 : index
    %15 = vector.load %arg6[%c0_12, %c0_13] : memref<32x128xf32, #tpu.memory_space<vmem>>, vector<32x128xf32>
    %cst_14 = arith.constant dense<0.000000e+00> : vector<256x128xf32>
    %16 = tpu.matmul %14, %15, %cst_14 {dimension_numbers = #tpu.dot_dimension_numbers<[1], [0], [0], [1], [0, 0, 1, 1], [], []>} : vector<256x32xf32>, vector<32x128xf32>, vector<256x128xf32> -> vector<256x128xf32>
    %c0_15 = arith.constant 0 : index
    %c0_16 = arith.constant 0 : index
    %17 = vector.load %arg7[%c0_15, %c0_16] : memref<1x128xf32, #tpu.memory_space<vmem>>, vector<1x128xf32>
    %18 = vector.broadcast %17 : vector<1x128xf32> to vector<256x128xf32>
    %19 = arith.addf %16, %18 : vector<256x128xf32>
    %c0_17 = arith.constant 0 : index
    %c0_18 = arith.constant 0 : index
    %20 = vector.load %arg8[%c0_17, %c0_18] : memref<256x128xf32, #tpu.memory_space<vmem>>, vector<256x128xf32>
    tpu.vector_store %arg8[%c0_17, %c0_18], %19 {strides = array<i32>} : memref<256x128xf32, #tpu.memory_space<vmem>>, vector<256x128xf32>,
    return
  }
  func.func @transform_0(%arg0: i32) -> (i32, i32) {
    %c0_i32 = arith.constant 0 : i32
    %c0_i32_0 = arith.constant 0 : i32
    return %arg0, %c0_i32 : i32, i32
  }
  func.func @transform_1(%arg0: i32) -> (i32, i32) {
    %c0_i32 = arith.constant 0 : i32
    %c0_i32_0 = arith.constant 0 : i32
    %c0_i32_1 = arith.constant 0 : i32
    return %c0_i32, %c0_i32_0 : i32, i32
  }
  func.func @transform_2(%arg0: i32) -> (i32, i32) {
    %c0_i32 = arith.constant 0 : i32
    %c0_i32_0 = arith.constant 0 : i32
    %c0_i32_1 = arith.constant 0 : i32
    return %c0_i32, %c0_i32_0 : i32, i32
  }
  func.func @transform_3(%arg0: i32) -> (i32, i32) {
    %c0_i32 = arith.constant 0 : i32
    %c0_i32_0 = arith.constant 0 : i32
    %c0_i32_1 = arith.constant 0 : i32
    return %c0_i32, %c0_i32_0 : i32, i32
  }
  func.func @transform_4(%arg0: i32) -> (i32, i32) {
    %c0_i32 = arith.constant 0 : i32
    %c0_i32_0 = arith.constant 0 : i32
    %c0_i32_1 = arith.constant 0 : i32
    return %c0_i32, %c0_i32_0 : i32, i32
  }
  func.func @transform_5(%arg0: i32) -> (i32, i32) {
    %c0_i32 = arith.constant 0 : i32
    %c0_i32_0 = arith.constant 0 : i32
    %c0_i32_1 = arith.constant 0 : i32
    return %c0_i32, %c0_i32_0 : i32, i32
  }
  func.func @transform_6(%arg0: i32) -> (i32, i32) {
    %c0_i32 = arith.constant 0 : i32
    %c0_i32_0 = arith.constant 0 : i32
    %c0_i32_1 = arith.constant 0 : i32
    return %c0_i32, %c0_i32_0 : i32, i32
  }
  func.func @transform_7(%arg0: i32) -> (i32, i32) {
    %c0_i32 = arith.constant 0 : i32
    %c0_i32_0 = arith.constant 0 : i32
    return %arg0, %c0_i32 : i32, i32
  }
}

</mosaic_0001>

<bundles_post_ra>
// kernel: tpu_custom_call.1
= control target key start
LH: loop header
LB: loop body
LE: loop exit
PB: predicated region body
PF: predicated region fallthrough
CT: control target
= control target key end

     0   :  { %vm68_vm0 = vcmask 130048   ;;  %s1994_s0 = inlined_call_operand.vmem [shape: f32[256,16], index: 0, kind: input, shape index: {}]   ;;  %s1995_s1 = inlined_call_operand.vmem [shape: f32[16,32], index: 1, kind: input, shape index: {}]   ;;  %s1996_s2 = inlined_call_operand.vmem [shape: f32[1,32], index: 2, kind: input, shape index: {}]   ;;  %s1997_s3 = inlined_call_operand.vmem [shape: f32[32,32], index: 3, kind: input, shape index: {}]   ;;  %s1998_s4 = inlined_call_operand.vmem [shape: f32[1,32], index: 4, kind: input, shape index: {}]   ;;  %s1999_s5 = inlined_call_operand.vmem [shape: f32[32,128], index: 5, kind: input, shape index: {}]   ;;  %s2000_s6 = inlined_call_operand.vmem [shape: f32[1,128], index: 6, kind: input, shape index: {}]   ;;  %s2001_s7 = inlined_call_operand.hbm [shape: f32[256,128], index: 7, kind: output, shape index: {}]  }
   0x1   :  { %v59_v0 = vld [vmem:[%s1995_s1] sm:$0xff]  ;;  %v60_v1 = vld [vmem:[%s1995_s1 + $0x8] sm:$0xff]  ;;  %v29_v5 = vld [vmem:[%s1994_s0 + $0x10] sm:$0xff] }
   0x2   :  { %v27_v2 = vld [vmem:[%s1994_s0] sm:$0xff]  ;;  %v1536_v3 = vpack.c.bf16 %v60_v1, %v59_v0  ;;  %v28_v4 = vld [vmem:[%s1994_s0 + $0x8] sm:$0xff]  ;;  %v45_v8 = vld [vmem:[%s1994_s0 + $0x90] sm:$0xff] }
   0x3   :  { %1376 = vmatprep.mubr.msk.f32.mxu0 %vm68_vm0, %v27_v2  ;;  %v43_v6 = vld [vmem:[%s1994_s0 + $0x80] sm:$0xff]  ;;  %v44_v7 = vld [vmem:[%s1994_s0 + $0x88] sm:$0xff]  ;;  %v30_v9 = vld [vmem:[%s1994_s0 + $0x18] sm:$0xff] }
   0x4   :  { %1537 = vmatprep.subr.bf16.mxu0 %v1536_v3  ;;  %1556 = vmatprep.subr.bf16.mxu1 %v1536_v3  ;;  %v31_v10 = vld [vmem:[%s1994_s0 + $0x20] sm:$0xff]  ;;  %v46_v11 = vld [vmem:[%s1994_s0 + $0x98] sm:$0xff]  ;;  %v32_v13 = vld [vmem:[%s1994_s0 + $0x28] sm:$0xff] }
   0x5   :  { %1539 = vmatpush3.bf16.msra.mxu0 %v1536_v3  ;;  %1557 = vmatpush3.bf16.msra.mxu1 %v1536_v3  ;;  %v47_v12 = vld [vmem:[%s1994_s0 + $0xa0] sm:$0xff]  ;;  %v423_v15 = vld [vmem:[%s1997_s3 + $0x8] sm:$0xff]  ;;  %v424_v17 = vld [vmem:[%s1997_s3 + $0x10] sm:$0xff] }
   0x6   :  { %1400 = vmatprep.mubr.msk.f32.mxu1 %vm68_vm0, %v43_v6  ;;  %v422_v14 = vld [vmem:[%s1997_s3] sm:$0xff]  ;;  %v425_v18 = vld [vmem:[%s1997_s3 + $0x18] sm:$0xff] }
   0x7   :  { %v1540_v16 = vpack.c.bf16 %v423_v15, %v422_v14 }
   0x8   :  { %1377 = vmatmul.mubr.msk.f32.vlgmr.msra.gmra.mrb[0].mxu0 %vm68_vm0, %v28_v4  ;;  %1401 = vmatmul.mubr.msk.f32.vlgmr.msra.gmra.mrb[0].mxu1 %vm68_vm0, %v44_v7 }
   0x9   :  { %1379 = vmatprep.mubr.msk.f32.mxu0 %vm68_vm0, %v29_v5  ;;  %1403 = vmatprep.mubr.msk.f32.mxu1 %vm68_vm0, %v45_v8 }
   0xc   :  { %1380 = vmatmul.mubr.msk.f32.gmra.mrb[2].mxu0 %vm68_vm0, %v30_v9  ;;  %1404 = vmatmul.mubr.msk.f32.gmra.mrb[2].mxu1 %vm68_vm0, %v46_v11 }
   0xd   :  { %1382 = vmatprep.mubr.msk.f32.mxu0 %vm68_vm0, %v31_v10 }
   0xe   :  { %12 = vsyncpa [#allocation3], 0  ;;  %v33_v19 = vld [vmem:[%s1994_s0 + $0x30] sm:$0xff]  ;;  %1406 = vmatprep.mubr.msk.f32.mxu1 %vm68_vm0, %v47_v12  ;;  %v48_v20 = vld [vmem:[%s1994_s0 + $0xa8] sm:$0xff]  ;;  %v1544_v21 = vpack.c.bf16 %v425_v18, %v424_v17  ;;  %1541 = vmatprep.subr.bf16.mxu1 %v1540_v16  ;;  %vm433_vm1 = vcmask 261120  }
   0xf   :  { %v49_v22 = vld [vmem:[%s1994_s0 + $0xb0] sm:$0xff]  ;;  %1543 = vmatpush3.bf16.msra.mxu1 %v1540_v16  ;;  %v34_v23 = vld [vmem:[%s1994_s0 + $0x38] sm:$0xff]  ;;  %v35_v24 = vld [vmem:[%s1994_s0 + $0x40] sm:$0xff] }
  0x10   :  { %1383 = vmatmul.mubr.msk.f32.gmra.mrb[4].mxu0 %vm68_vm0, %v32_v13  ;;  %1407 = vmatmul.mubr.msk.f32.gmra.mrb[4].mxu1 %vm68_vm0, %v48_v20  ;;  %v50_v25 = vld [vmem:[%s1994_s0 + $0xb8] sm:$0xff]  ;;  %v51_v26 = vld [vmem:[%s1994_s0 + $0xc0] sm:$0xff]  ;;  %v36_v27 = vld [vmem:[%s1994_s0 + $0x48] sm:$0xff] }
  0x11   :  { %1385 = vmatprep.mubr.msk.f32.mxu0 %vm68_vm0, %v33_v19  ;;  %1409 = vmatprep.mubr.msk.f32.mxu1 %vm68_vm0, %v49_v22  ;;  %v37_v28 = vld [vmem:[%s1994_s0 + $0x50] sm:$0xff]  ;;  %v52_v29 = vld [vmem:[%s1994_s0 + $0xc8] sm:$0xff]  ;;  %v38_v31 = vld [vmem:[%s1994_s0 + $0x58] sm:$0xff] }
  0x12   :  { %1545 = vmatprep.subr.bf16.mxu1 %v1544_v21  ;;  %v53_v30 = vld [vmem:[%s1994_s0 + $0xd0] sm:$0xff]  ;;  %v39_v32 = vld [vmem:[%s1994_s0 + $0x60] sm:$0xff]  ;;  %v54_v33 = vld [vmem:[%s1994_s0 + $0xd8] sm:$0xff] }
  0x13   :  { %1547 = vmatpush3.bf16.msra.mxu1 %v1544_v21  ;;  %v55_v34 = vld [vmem:[%s1994_s0 + $0xe0] sm:$0xff]  ;;  %v40_v35 = vld [vmem:[%s1994_s0 + $0x68] sm:$0xff]  ;;  %v41_v36 = vld [vmem:[%s1994_s0 + $0x70] sm:$0xff] }
  0x14   :  { %1386 = vmatmul.mubr.msk.f32.gmra.mrb[6].mxu0 %vm68_vm0, %v34_v23  ;;  %1410 = vmatmul.mubr.msk.f32.gmra.mrb[6].mxu1 %vm68_vm0, %v50_v25  ;;  %v56_v37 = vld [vmem:[%s1994_s0 + $0xe8] sm:$0xff]  ;;  %v57_v38 = vld [vmem:[%s1994_s0 + $0xf0] sm:$0xff]  ;;  %v42_v39 = vld [vmem:[%s1994_s0 + $0x78] sm:$0xff] }
  0x15   :  { %1388 = vmatprep.mubr.msk.f32.mxu0 %vm68_vm0, %v35_v24  ;;  %1412 = vmatprep.mubr.msk.f32.mxu1 %vm68_vm0, %v51_v26  ;;  %v58_v40 = vld [vmem:[%s1994_s0 + $0xf8] sm:$0xff]  ;;  %v787_v41 = vld [vmem:[%s1999_s5] sm:$0xff]  ;;  %v788_v42 = vld [vmem:[%s1999_s5 + $0x8] sm:$0xff] }
  0x16   :  { %v789_v43 = vld [vmem:[%s1999_s5 + $0x10] sm:$0xff]  ;;  %v1548_v44 = vpack.c.bf16 %v788_v42, %v787_v41  ;;  %v790_v45 = vld [vmem:[%s1999_s5 + $0x18] sm:$0xff]  ;;  %v1789_v47 = vld [vmem:[%s1996_s2] ss:$0 sm:$0xff] }
  0x17   :  { %v1552_v46 = vpack.c.bf16 %v790_v45, %v789_v43 }
  0x18   :  { %1389 = vmatmul.mubr.msk.f32.gmra.mrb[8].mxu0 %vm68_vm0, %v36_v27  ;;  %1413 = vmatmul.mubr.msk.f32.gmra.mrb[8].mxu1 %vm68_vm0, %v52_v29 }
  0x19   :  { %1391 = vmatprep.mubr.msk.f32.mxu0 %vm68_vm0, %v37_v28  ;;  %1415 = vmatprep.mubr.msk.f32.mxu1 %vm68_vm0, %v53_v30 }
  0x1a   :  { %1549 = vmatprep.subr.bf16.mxu0 %v1548_v44 }
  0x1b   :  { %1551 = vmatpush3.bf16.msra.mxu0 %v1548_v44 }
  0x1c   :  { %1392 = vmatmul.mubr.msk.f32.gmra.mrb[10].mxu0 %vm68_vm0, %v38_v31  ;;  %1416 = vmatmul.mubr.msk.f32.gmra.mrb[10].mxu1 %vm68_vm0, %v54_v33 }
  0x1d   :  { %1394 = vmatprep.mubr.msk.f32.mxu0 %vm68_vm0, %v39_v32  ;;  %1418 = vmatprep.mubr.msk.f32.mxu1 %vm68_vm0, %v55_v34 }
  0x1e   :  { %1553 = vmatprep.subr.bf16.mxu0 %v1552_v46 }
  0x1f   :  { %1555 = vmatpush3.bf16.msra.mxu0 %v1552_v46 }
  0x20   :  { %1395 = vmatmul.mubr.msk.f32.gmra.mrb[12].mxu0 %vm68_vm0, %v40_v35  ;;  %1419 = vmatmul.mubr.msk.f32.gmra.mrb[12].mxu1 %vm68_vm0, %v56_v37 }
  0x21   :  { %1397 = vmatprep.mubr.msk.f32.mxu0 %vm68_vm0, %v41_v36  ;;  %1421 = vmatprep.mubr.msk.f32.mxu1 %vm68_vm0, %v57_v38 }
  0x24   :  { %1398 = vmatmul.mubr.msk.f32.gmra.mrb[14].mxu0 %vm68_vm0, %v42_v39  ;;  %1422 = vmatmul.mubr.msk.f32.gmra.mrb[14].mxu1 %vm68_vm0, %v58_v40 }
  0xdb   :  { %v1378_v48 = vpop.f32.mrb[0].mxu0  ;;  %v1792_v51 = vpop.f32.mrb[0].mxu1 }
  0xdc   :  { %v237_v49 = vadd.f32 %v1378_v48, %v1789_v47  ;;  %v231_v50 = vpop.f32.mrb[1].mxu0  ;;  %v1795_v53 = vpop.f32.mrb[1].mxu1 }
  0xdd   :  { %v232_v52 = vadd.f32 %v1789_v47, %v231_v50  ;;  %v312_v40 = vadd.f32 %v1789_v47, %v1795_v53  ;;  %v317_v53 = vadd.f32 %v1792_v51, %v1789_v47 }
  0xde   :  { %v391_v56 = vmax.f32 %v237_v49, 0.0 }
  0xdf   :  { %v390_v54 = vmax.f32 %v232_v52, 0.0  ;;  %v1381_v55 = vpop.f32.mrb[2].mxu0  ;;  %v1798_v59 = vpop.f32.mrb[2].mxu1  ;;  %v406_v49 = vmax.f32 %v312_v40, 0.0 }
  0xe0   :  { %v247_v57 = vadd.f32 %v1381_v55, %v1789_v47  ;;  %v241_v58 = vpop.f32.mrb[3].mxu0  ;;  %v1802_v61 = vpop.f32.mrb[3].mxu1 }
  0xe1   :  { %v242_v60 = vadd.f32 %v1789_v47, %v241_v58  ;;  %1432 = vmatprep.mubr.msk.f32.mxu1 %vm433_vm1, %v390_v54  ;;  %v322_v50 = vadd.f32 %v1789_v47, %v1802_v61 }
  0xe2   :  { %1433 = vmatmul.mubr.msk.f32.vlgmr.msra.gmra.mrb[16].mxu1 %vm433_vm1, %v391_v56  ;;  %v393_v0 = vmax.f32 %v247_v57, 0.0  ;;  %v407_v56 = vmax.f32 %v317_v53, 0.0  ;;  %v327_v57 = vadd.f32 %v1798_v59, %v1789_v47 }
  0xe3   :  { %v392_v62 = vmax.f32 %v242_v60, 0.0  ;;  %v1384_v63 = vpop.f32.mrb[4].mxu0  ;;  %v1806_v3 = vpop.f32.mrb[4].mxu1  ;;  %v408_v54 = vmax.f32 %v322_v50, 0.0 }
  0xe4   :  { %v257_v1 = vadd.f32 %v1384_v63, %v1789_v47  ;;  %v251_v2 = vpop.f32.mrb[5].mxu0  ;;  %v331_v5 = vpop.f32.mrb[5].mxu1  ;;  %v409_v60 = vmax.f32 %v327_v57, 0.0  ;;  %v337_v61 = vadd.f32 %v1806_v3, %v1789_v47 }
  0xe5   :  { %v252_v4 = vadd.f32 %v1789_v47, %v251_v2  ;;  %1435 = vmatprep.mubr.msk.f32.mxu1 %vm433_vm1, %v392_v62  ;;  %v332_v55 = vadd.f32 %v1789_v47, %v331_v5 }
  0xe6   :  { %1436 = vmatmul.mubr.msk.f32.gmra.mrb[18].mxu1 %vm433_vm1, %v393_v0  ;;  %v395_v8 = vmax.f32 %v257_v1, 0.0  ;;  %v411_v0 = vmax.f32 %v337_v61, 0.0 }
  0xe7   :  { %v394_v6 = vmax.f32 %v252_v4, 0.0  ;;  %v1387_v7 = vpop.f32.mrb[6].mxu0  ;;  %v1812_v11 = vpop.f32.mrb[6].mxu1  ;;  %v410_v58 = vmax.f32 %v332_v55, 0.0 }
  0xe8   :  { %v267_v9 = vadd.f32 %v1387_v7, %v1789_v47  ;;  %v261_v10 = vpop.f32.mrb[7].mxu0  ;;  %v341_v13 = vpop.f32.mrb[7].mxu1  ;;  %v347_v59 = vadd.f32 %v1812_v11, %v1789_v47 }
  0xe9   :  { %v262_v12 = vadd.f32 %v1789_v47, %v261_v10  ;;  %1438 = vmatprep.mubr.msk.f32.mxu1 %vm433_vm1, %v394_v6  ;;  %v342_v51 = vadd.f32 %v1789_v47, %v341_v13 }
  0xea   :  { %1439 = vmatmul.mubr.msk.f32.gmra.mrb[20].mxu1 %vm433_vm1, %v395_v8  ;;  %v397_v16 = vmax.f32 %v267_v9, 0.0  ;;  %v413_v4 = vmax.f32 %v347_v59, 0.0 }
  0xeb   :  { %v396_v14 = vmax.f32 %v262_v12, 0.0  ;;  %v1390_v15 = vpop.f32.mrb[8].mxu0  ;;  %v1818_v19 = vpop.f32.mrb[8].mxu1  ;;  %v412_v62 = vmax.f32 %v342_v51, 0.0 }
  0xec   :  { %v277_v17 = vadd.f32 %v1390_v15, %v1789_v47  ;;  %v271_v18 = vpop.f32.mrb[9].mxu0  ;;  %v351_v21 = vpop.f32.mrb[9].mxu1  ;;  %v357_v3 = vadd.f32 %v1818_v19, %v1789_v47 }
  0xed   :  { %v272_v20 = vadd.f32 %v1789_v47, %v271_v18  ;;  %1441 = vmatprep.mubr.msk.f32.mxu1 %vm433_vm1, %v396_v14  ;;  %v352_v63 = vadd.f32 %v1789_v47, %v351_v21 }
  0xee   :  { %1442 = vmatmul.mubr.msk.f32.gmra.mrb[22].mxu1 %vm433_vm1, %v397_v16  ;;  %v399_v24 = vmax.f32 %v277_v17, 0.0  ;;  %v415_v7 = vmax.f32 %v357_v3, 0.0  ;;  %v1879_v17 = vld [vmem:[%s1998_s4] ss:$0 sm:$0xff] }
  0xef   :  { %v398_v22 = vmax.f32 %v272_v20, 0.0  ;;  %v1393_v23 = vpop.f32.mrb[10].mxu0  ;;  %v1417_v27 = vpop.f32.mrb[10].mxu1  ;;  %v414_v1 = vmax.f32 %v352_v63, 0.0 }
  0xf0   :  { %v287_v25 = vadd.f32 %v1393_v23, %v1789_v47  ;;  %v281_v26 = vpop.f32.mrb[11].mxu0  ;;  %v361_v29 = vpop.f32.mrb[11].mxu1  ;;  %v367_v8 = vadd.f32 %v1417_v27, %v1789_v47 }
  0xf1   :  { %v282_v28 = vadd.f32 %v1789_v47, %v281_v26  ;;  %1444 = vmatprep.mubr.msk.f32.mxu1 %vm433_vm1, %v398_v22  ;;  %v362_v2 = vadd.f32 %v1789_v47, %v361_v29 }
  0xf2   :  { %1445 = vmatmul.mubr.msk.f32.gmra.mrb[24].mxu1 %vm433_vm1, %v399_v24  ;;  %v401_v32 = vmax.f32 %v287_v25, 0.0  ;;  %v417_v11 = vmax.f32 %v367_v8, 0.0 }
  0xf3   :  { %v400_v30 = vmax.f32 %v282_v28, 0.0  ;;  %v1396_v31 = vpop.f32.mrb[12].mxu0  ;;  %v1420_v35 = vpop.f32.mrb[12].mxu1  ;;  %v416_v5 = vmax.f32 %v362_v2, 0.0 }
  0xf4   :  { %v297_v33 = vadd.f32 %v1396_v31, %v1789_v47  ;;  %v291_v34 = vpop.f32.mrb[13].mxu0  ;;  %v371_v37 = vpop.f32.mrb[13].mxu1  ;;  %v377_v12 = vadd.f32 %v1420_v35, %v1789_v47 }
  0xf5   :  { %v292_v36 = vadd.f32 %v1789_v47, %v291_v34  ;;  %1447 = vmatprep.mubr.msk.f32.mxu1 %vm433_vm1, %v400_v30  ;;  %v372_v6 = vadd.f32 %v1789_v47, %v371_v37 }
  0xf6   :  { %1448 = vmatmul.mubr.msk.f32.gmra.mrb[26].mxu1 %vm433_vm1, %v401_v32  ;;  %v403_v41 = vmax.f32 %v297_v33, 0.0  ;;  %v419_v14 = vmax.f32 %v377_v12, 0.0 }
  0xf7   :  { %v402_v38 = vmax.f32 %v292_v36, 0.0  ;;  %v1399_v39 = vpop.f32.mrb[14].mxu0  ;;  %v1423_v44 = vpop.f32.mrb[14].mxu1  ;;  %v418_v9 = vmax.f32 %v372_v6, 0.0 }
  0xf8   :  { %v307_v42 = vadd.f32 %v1399_v39, %v1789_v47  ;;  %v301_v43 = vpop.f32.mrb[15].mxu0  ;;  %v381_v46 = vpop.f32.mrb[15].mxu1  ;;  %v387_v15 = vadd.f32 %v1423_v44, %v1789_v47 }
  0xf9   :  { %v302_v45 = vadd.f32 %v1789_v47, %v301_v43  ;;  %1450 = vmatprep.mubr.msk.f32.mxu1 %vm433_vm1, %v402_v38  ;;  %v382_v10 = vadd.f32 %v1789_v47, %v381_v46 }
  0xfa   :  { %1451 = vmatmul.mubr.msk.f32.gmra.mrb[28].mxu1 %vm433_vm1, %v403_v41  ;;  %v405_v52 = vmax.f32 %v307_v42, 0.0  ;;  %v421_v16 = vmax.f32 %v387_v15, 0.0 }
  0xfb   :  { %v404_v48 = vmax.f32 %v302_v45, 0.0  ;;  %v420_v13 = vmax.f32 %v382_v10, 0.0 }
  0xfd   :  { %1453 = vmatprep.mubr.msk.f32.mxu1 %vm433_vm1, %v404_v48 }
  0xfe   :  { %1454 = vmatmul.mubr.msk.f32.gmra.mrb[30].mxu1 %vm433_vm1, %v405_v52 }
  0xff   :  { %1456 = vmatprep.mubr.msk.f32.mxu1 %vm433_vm1, %v406_v49 }
 0x102   :  { %1457 = vmatmul.mubr.msk.f32.gmra.mrb[32].mxu1 %vm433_vm1, %v407_v56 }
 0x103   :  { %1459 = vmatprep.mubr.msk.f32.mxu1 %vm433_vm1, %v408_v54 }
 0x106   :  { %1460 = vmatmul.mubr.msk.f32.gmra.mrb[34].mxu1 %vm433_vm1, %v409_v60 }
 0x107   :  { %1462 = vmatprep.mubr.msk.f32.mxu1 %vm433_vm1, %v410_v58 }
 0x10a   :  { %1463 = vmatmul.mubr.msk.f32.gmra.mrb[36].mxu1 %vm433_vm1, %v411_v0 }
 0x10b   :  { %1465 = vmatprep.mubr.msk.f32.mxu1 %vm433_vm1, %v412_v62 }
 0x10e   :  { %1466 = vmatmul.mubr.msk.f32.gmra.mrb[38].mxu1 %vm433_vm1, %v413_v4 }
 0x10f   :  { %1468 = vmatprep.mubr.msk.f32.mxu1 %vm433_vm1, %v414_v1 }
 0x112   :  { %1469 = vmatmul.mubr.msk.f32.gmra.mrb[40].mxu1 %vm433_vm1, %v415_v7 }
 0x113   :  { %1471 = vmatprep.mubr.msk.f32.mxu1 %vm433_vm1, %v416_v5 }
 0x116   :  { %1472 = vmatmul.mubr.msk.f32.gmra.mrb[42].mxu1 %vm433_vm1, %v417_v11 }
 0x117   :  { %1474 = vmatprep.mubr.msk.f32.mxu1 %vm433_vm1, %v418_v9 }
 0x11a   :  { %1475 = vmatmul.mubr.msk.f32.gmra.mrb[44].mxu1 %vm433_vm1, %v419_v14 }
 0x11b   :  { %1477 = vmatprep.mubr.msk.f32.mxu1 %vm433_vm1, %v420_v13 }
 0x11e   :  { %1478 = vmatmul.mubr.msk.f32.gmra.mrb[46].mxu1 %vm433_vm1, %v421_v16 }
 0x1b5   :  { %v1434_v18 = vpop.f32.mrb[16].mxu1 }
 0x1b6   :  { %v602_v19 = vadd.f32 %v1434_v18, %v1879_v17  ;;  %v596_v20 = vpop.f32.mrb[17].mxu1 }
 0x1b7   :  { %v597_v21 = vadd.f32 %v1879_v17, %v596_v20 }
 0x1b8   :  { %v756_v23 = vmax.f32 %v602_v19, 0.0 }
 0x1b9   :  { %v755_v22 = vmax.f32 %v597_v21, 0.0  ;;  %v1437_v47 = vpop.f32.mrb[18].mxu1 }
 0x1ba   :  { %v612_v24 = vadd.f32 %v1437_v47, %v1879_v17  ;;  %v606_v25 = vpop.f32.mrb[19].mxu1 }
 0x1bb   :  { %v607_v26 = vadd.f32 %v1879_v17, %v606_v25  ;;  %1488 = vmatprep.mubr.msk.f32.mxu0 %vm433_vm1, %v755_v22 }
 0x1bc   :  { %1489 = vmatmul.mubr.msk.f32.vlgmr.msra.gmra.mrb[16].mxu0 %vm433_vm1, %v756_v23  ;;  %v758_v29 = vmax.f32 %v612_v24, 0.0 }
 0x1bd   :  { %v757_v27 = vmax.f32 %v607_v26, 0.0  ;;  %v1440_v28 = vpop.f32.mrb[20].mxu1 }
 0x1be   :  { %v622_v30 = vadd.f32 %v1440_v28, %v1879_v17  ;;  %v616_v31 = vpop.f32.mrb[21].mxu1 }
 0x1bf   :  { %v617_v32 = vadd.f32 %v1879_v17, %v616_v31  ;;  %1491 = vmatprep.mubr.msk.f32.mxu0 %vm433_vm1, %v757_v27 }
 0x1c0   :  { %1492 = vmatmul.mubr.msk.f32.gmra.mrb[18].mxu0 %vm433_vm1, %v758_v29  ;;  %v760_v35 = vmax.f32 %v622_v30, 0.0 }
 0x1c1   :  { %v759_v33 = vmax.f32 %v617_v32, 0.0  ;;  %v1443_v34 = vpop.f32.mrb[22].mxu1 }
 0x1c2   :  { %v632_v36 = vadd.f32 %v1443_v34, %v1879_v17  ;;  %v626_v37 = vpop.f32.mrb[23].mxu1 }
 0x1c3   :  { %v627_v38 = vadd.f32 %v1879_v17, %v626_v37  ;;  %1494 = vmatprep.mubr.msk.f32.mxu0 %vm433_vm1, %v759_v33 }
 0x1c4   :  { %1495 = vmatmul.mubr.msk.f32.gmra.mrb[20].mxu0 %vm433_vm1, %v760_v35  ;;  %v762_v41 = vmax.f32 %v632_v36, 0.0 }
 0x1c5   :  { %v761_v39 = vmax.f32 %v627_v38, 0.0  ;;  %v1446_v40 = vpop.f32.mrb[24].mxu1 }
 0x1c6   :  { %v642_v42 = vadd.f32 %v1446_v40, %v1879_v17  ;;  %v636_v43 = vpop.f32.mrb[25].mxu1 }
 0x1c7   :  { %v637_v44 = vadd.f32 %v1879_v17, %v636_v43  ;;  %1497 = vmatprep.mubr.msk.f32.mxu0 %vm433_vm1, %v761_v39 }
 0x1c8   :  { %1498 = vmatmul.mubr.msk.f32.gmra.mrb[22].mxu0 %vm433_vm1, %v762_v41  ;;  %v764_v48 = vmax.f32 %v642_v42, 0.0 }
 0x1c9   :  { %v763_v45 = vmax.f32 %v637_v44, 0.0  ;;  %v1449_v46 = vpop.f32.mrb[26].mxu1 }
 0x1ca   :  { %v652_v49 = vadd.f32 %v1449_v46, %v1879_v17  ;;  %v646_v50 = vpop.f32.mrb[27].mxu1 }
 0x1cb   :  { %v647_v52 = vadd.f32 %v1879_v17, %v646_v50  ;;  %1500 = vmatprep.mubr.msk.f32.mxu0 %vm433_vm1, %v763_v45 }
 0x1cc   :  { %1501 = vmatmul.mubr.msk.f32.gmra.mrb[24].mxu0 %vm433_vm1, %v764_v48  ;;  %v766_v55 = vmax.f32 %v652_v49, 0.0 }
 0x1cd   :  { %v765_v53 = vmax.f32 %v647_v52, 0.0  ;;  %v1452_v54 = vpop.f32.mrb[28].mxu1  ;;  %v1948_v52 = vld [vmem:[%s2000_s6] ss:$0 sm:$0xff]  ;;  %s1585_s6 = smov [#allocation2]  }
 0x1ce   :  { %v662_v56 = vadd.f32 %v1452_v54, %v1879_v17  ;;  %v656_v57 = vpop.f32.mrb[29].mxu1  ;;  %s1156_s12 = sshll.u32 %s1585_s6, 4  ;;  %s1157_s12 = int_to_ptr.vmem [resolvable:$true] %s1156_s12 }
 0x1cf   :  { %v657_v58 = vadd.f32 %v1879_v17, %v656_v57  ;;  %1503 = vmatprep.mubr.msk.f32.mxu0 %vm433_vm1, %v765_v53  ;;  %s1561_s13 = scalar_lea.vmem %s1157_s12, 4096  ;;  %p1566_p1 = scmp.lt.s32.totalorder %s1157_s12, %s1157_s12 }
 0x1d0   :  { %1504 = vmatmul.mubr.msk.f32.gmra.mrb[26].mxu0 %vm433_vm1, %v766_v55  ;;  %v768_v61 = vmax.f32 %v662_v56, 0.0  ;;  %p1562_p0 = scmp.ne.s32.totalorder %s1157_s12, %s1561_s13  ;;  %p1567_p2 = scmp.lt.s32.totalorder %s1561_s13, %s1561_s13 }
 0x1d1   :  { %v767_v51 = vmax.f32 %v657_v58, 0.0  ;;  %v1455_v60 = vpop.f32.mrb[30].mxu1 }
 0x1d2   :  { %v672_v62 = vadd.f32 %v1455_v60, %v1879_v17  ;;  %v666_v63 = vpop.f32.mrb[31].mxu1  ;;  %p1568_p3 = por %p1567_p2, %p1566_p1 }
 0x1d3   :  { %v667_v0 = vadd.f32 %v1879_v17, %v666_v63  ;;  %1506 = vmatprep.mubr.msk.f32.mxu0 %vm433_vm1, %v767_v51 }
 0x1d4   :  { %1507 = vmatmul.mubr.msk.f32.gmra.mrb[28].mxu0 %vm433_vm1, %v768_v61  ;;  %v770_v2 = vmax.f32 %v672_v62, 0.0  ;;  %p1569_p4 = pnand %p1568_p3, %p1562_p0 }
 0x1d5   :  { %v769_v59 = vmax.f32 %v667_v0, 0.0  ;;  %v1458_v1 = vpop.f32.mrb[32].mxu1 }
 0x1d6   :  { %v682_v4 = vadd.f32 %v1458_v1, %v1879_v17  ;;  %v676_v3 = vpop.f32.mrb[33].mxu1 }
 0x1d7   :  { %v677_v5 = vadd.f32 %v1879_v17, %v676_v3  ;;  %1509 = vmatprep.mubr.msk.f32.mxu0 %vm433_vm1, %v769_v59 }
 0x1d8   :  { %1510 = vmatmul.mubr.msk.f32.gmra.mrb[30].mxu0 %vm433_vm1, %v770_v2  ;;  %v772_v8 = vmax.f32 %v682_v4, 0.0 }
 0x1d9   :  { %v771_v6 = vmax.f32 %v677_v5, 0.0  ;;  %v1461_v7 = vpop.f32.mrb[34].mxu1 }
 0x1da   :  { %v692_v9 = vadd.f32 %v1461_v7, %v1879_v17  ;;  %v686_v10 = vpop.f32.mrb[35].mxu1 }
 0x1db   :  { %v687_v11 = vadd.f32 %v1879_v17, %v686_v10  ;;  %1512 = vmatprep.mubr.msk.f32.mxu0 %vm433_vm1, %v771_v6 }
 0x1dc   :  { %1513 = vmatmul.mubr.msk.f32.gmra.mrb[32].mxu0 %vm433_vm1, %v772_v8  ;;  %v774_v14 = vmax.f32 %v692_v9, 0.0 }
 0x1dd   :  { %v773_v12 = vmax.f32 %v687_v11, 0.0  ;;  %v1464_v13 = vpop.f32.mrb[36].mxu1 }
 0x1de   :  { %v702_v15 = vadd.f32 %v1464_v13, %v1879_v17  ;;  %v696_v16 = vpop.f32.mrb[37].mxu1 }
 0x1df   :  { %v697_v18 = vadd.f32 %v1879_v17, %v696_v16  ;;  %1515 = vmatprep.mubr.msk.f32.mxu0 %vm433_vm1, %v773_v12 }
 0x1e0   :  { %1516 = vmatmul.mubr.msk.f32.gmra.mrb[34].mxu0 %vm433_vm1, %v774_v14  ;;  %v776_v21 = vmax.f32 %v702_v15, 0.0 }
 0x1e1   :  { %v775_v19 = vmax.f32 %v697_v18, 0.0  ;;  %v1467_v20 = vpop.f32.mrb[38].mxu1 }
 0x1e2   :  { %v712_v22 = vadd.f32 %v1467_v20, %v1879_v17  ;;  %v706_v47 = vpop.f32.mrb[39].mxu1 }
 0x1e3   :  { %v707_v23 = vadd.f32 %v1879_v17, %v706_v47  ;;  %1518 = vmatprep.mubr.msk.f32.mxu0 %vm433_vm1, %v775_v19 }
 0x1e4   :  { %1519 = vmatmul.mubr.msk.f32.gmra.mrb[36].mxu0 %vm433_vm1, %v776_v21  ;;  %v778_v26 = vmax.f32 %v712_v22, 0.0 }
 0x1e5   :  { %v777_v24 = vmax.f32 %v707_v23, 0.0  ;;  %v1470_v25 = vpop.f32.mrb[40].mxu1 }
 0x1e6   :  { %v722_v27 = vadd.f32 %v1470_v25, %v1879_v17  ;;  %v716_v28 = vpop.f32.mrb[41].mxu1 }
 0x1e7   :  { %v717_v29 = vadd.f32 %v1879_v17, %v716_v28  ;;  %1521 = vmatprep.mubr.msk.f32.mxu0 %vm433_vm1, %v777_v24 }
 0x1e8   :  { %1522 = vmatmul.mubr.msk.f32.gmra.mrb[38].mxu0 %vm433_vm1, %v778_v26  ;;  %v780_v32 = vmax.f32 %v722_v27, 0.0 }
 0x1e9   :  { %v779_v30 = vmax.f32 %v717_v29, 0.0  ;;  %v1473_v31 = vpop.f32.mrb[42].mxu1 }
 0x1ea   :  { %v732_v33 = vadd.f32 %v1473_v31, %v1879_v17  ;;  %v726_v34 = vpop.f32.mrb[43].mxu1 }
 0x1eb   :  { %v727_v35 = vadd.f32 %v1879_v17, %v726_v34  ;;  %1524 = vmatprep.mubr.msk.f32.mxu0 %vm433_vm1, %v779_v30 }
 0x1ec   :  { %1525 = vmatmul.mubr.msk.f32.gmra.mrb[40].mxu0 %vm433_vm1, %v780_v32  ;;  %v782_v38 = vmax.f32 %v732_v33, 0.0 }
 0x1ed   :  { %v781_v36 = vmax.f32 %v727_v35, 0.0  ;;  %v1476_v37 = vpop.f32.mrb[44].mxu1 }
 0x1ee   :  { %v742_v39 = vadd.f32 %v1476_v37, %v1879_v17  ;;  %v736_v40 = vpop.f32.mrb[45].mxu1 }
 0x1ef   :  { %v737_v41 = vadd.f32 %v1879_v17, %v736_v40  ;;  %1527 = vmatprep.mubr.msk.f32.mxu0 %vm433_vm1, %v781_v36 }
 0x1f0   :  { %1528 = vmatmul.mubr.msk.f32.gmra.mrb[42].mxu0 %vm433_vm1, %v782_v38  ;;  %v784_v44 = vmax.f32 %v742_v39, 0.0 }
 0x1f1   :  { %v783_v42 = vmax.f32 %v737_v41, 0.0  ;;  %v1479_v43 = vpop.f32.mrb[46].mxu1 }
 0x1f2   :  { %v752_v45 = vadd.f32 %v1479_v43, %v1879_v17  ;;  %v746_v46 = vpop.f32.mrb[47].mxu1 }
 0x1f3   :  { %v747_v48 = vadd.f32 %v1879_v17, %v746_v46  ;;  %1530 = vmatprep.mubr.msk.f32.mxu0 %vm433_vm1, %v783_v42 }
 0x1f4   :  { %1531 = vmatmul.mubr.msk.f32.gmra.mrb[44].mxu0 %vm433_vm1, %v784_v44  ;;  %v786_v50 = vmax.f32 %v752_v45, 0.0 }
 0x1f5   :  { %v785_v49 = vmax.f32 %v747_v48, 0.0 }
 0x1f7   :  { %1533 = vmatprep.mubr.msk.f32.mxu0 %vm433_vm1, %v785_v49 }
 0x1f8   :  { %1534 = vmatmul.mubr.msk.f32.gmra.mrb[46].mxu0 %vm433_vm1, %v786_v50 }
 0x28f   :  { %v1490_v53 = vpop.f32.mrb[16].mxu0 }
 0x290   :  { %v966_v54 = vadd.f32 %v1490_v53, %v1948_v52  ;;  %v960_v55 = vpop.f32.mrb[17].mxu0 }
 0x291   :  { %v961_v17 = vadd.f32 %v1948_v52, %v960_v55 }
 0x292   :  { %1120 = vst [vmem:[#allocation2 + $0x8] sm:$0xff] %v966_v54 }
 0x293   :  { %1119 = vst [vmem:[#allocation2] sm:$0xff] %v961_v17  ;;  %v1493_v56 = vpop.f32.mrb[18].mxu0 }
 0x294   :  { %v976_v57 = vadd.f32 %v1493_v56, %v1948_v52  ;;  %v970_v58 = vpop.f32.mrb[19].mxu0 }
 0x295   :  { %v971_v51 = vadd.f32 %v1948_v52, %v970_v58 }
 0x296   :  { %1122 = vst [vmem:[#allocation2 + $0x18] sm:$0xff] %v976_v57 }
 0x297   :  { %1121 = vst [vmem:[#allocation2 + $0x10] sm:$0xff] %v971_v51  ;;  %v1496_v60 = vpop.f32.mrb[20].mxu0 }
 0x298   :  { %v986_v61 = vadd.f32 %v1496_v60, %v1948_v52  ;;  %v980_v62 = vpop.f32.mrb[21].mxu0 }
 0x299   :  { %v981_v63 = vadd.f32 %v1948_v52, %v980_v62 }
 0x29a   :  { %1124 = vst [vmem:[#allocation2 + $0x28] sm:$0xff] %v986_v61 }
 0x29b   :  { %1123 = vst [vmem:[#allocation2 + $0x20] sm:$0xff] %v981_v63  ;;  %v1499_v0 = vpop.f32.mrb[22].mxu0 }
 0x29c   :  { %v996_v59 = vadd.f32 %v1499_v0, %v1948_v52  ;;  %v990_v1 = vpop.f32.mrb[23].mxu0 }
 0x29d   :  { %v991_v2 = vadd.f32 %v1948_v52, %v990_v1 }
 0x29e   :  { %1126 = vst [vmem:[#allocation2 + $0x38] sm:$0xff] %v996_v59 }
 0x29f   :  { %1125 = vst [vmem:[#allocation2 + $0x30] sm:$0xff] %v991_v2  ;;  %v1502_v4 = vpop.f32.mrb[24].mxu0 }
 0x2a0   :  { %v1006_v3 = vadd.f32 %v1502_v4, %v1948_v52  ;;  %v1000_v5 = vpop.f32.mrb[25].mxu0 }
 0x2a1   :  { %v1001_v6 = vadd.f32 %v1948_v52, %v1000_v5 }
 0x2a2   :  { %1128 = vst [vmem:[#allocation2 + $0x48] sm:$0xff] %v1006_v3 }
 0x2a3   :  { %1127 = vst [vmem:[#allocation2 + $0x40] sm:$0xff] %v1001_v6  ;;  %v1505_v7 = vpop.f32.mrb[26].mxu0 }
 0x2a4   :  { %v1016_v8 = vadd.f32 %v1505_v7, %v1948_v52  ;;  %v1010_v9 = vpop.f32.mrb[27].mxu0 }
 0x2a5   :  { %v1011_v10 = vadd.f32 %v1948_v52, %v1010_v9 }
 0x2a6   :  { %1130 = vst [vmem:[#allocation2 + $0x58] sm:$0xff] %v1016_v8 }
 0x2a7   :  { %1129 = vst [vmem:[#allocation2 + $0x50] sm:$0xff] %v1011_v10  ;;  %v1508_v11 = vpop.f32.mrb[28].mxu0 }
 0x2a8   :  { %v1026_v12 = vadd.f32 %v1508_v11, %v1948_v52  ;;  %v1020_v13 = vpop.f32.mrb[29].mxu0 }
 0x2a9   :  { %v1021_v14 = vadd.f32 %v1948_v52, %v1020_v13 }
 0x2aa   :  { %1132 = vst [vmem:[#allocation2 + $0x68] sm:$0xff] %v1026_v12 }
 0x2ab   :  { %1131 = vst [vmem:[#allocation2 + $0x60] sm:$0xff] %v1021_v14  ;;  %v1511_v15 = vpop.f32.mrb[30].mxu0 }
 0x2ac   :  { %v1036_v16 = vadd.f32 %v1511_v15, %v1948_v52  ;;  %v1030_v18 = vpop.f32.mrb[31].mxu0 }
 0x2ad   :  { %v1031_v19 = vadd.f32 %v1948_v52, %v1030_v18 }
 0x2ae   :  { %1134 = vst [vmem:[#allocation2 + $0x78] sm:$0xff] %v1036_v16 }
 0x2af   :  { %1133 = vst [vmem:[#allocation2 + $0x70] sm:$0xff] %v1031_v19  ;;  %v1514_v20 = vpop.f32.mrb[32].mxu0 }
 0x2b0   :  { %v1046_v21 = vadd.f32 %v1514_v20, %v1948_v52  ;;  %v1040_v22 = vpop.f32.mrb[33].mxu0 }
 0x2b1   :  { %v1041_v47 = vadd.f32 %v1948_v52, %v1040_v22 }
 0x2b2   :  { %1136 = vst [vmem:[#allocation2 + $0x88] sm:$0xff] %v1046_v21 }
 0x2b3   :  { %1135 = vst [vmem:[#allocation2 + $0x80] sm:$0xff] %v1041_v47  ;;  %v1517_v23 = vpop.f32.mrb[34].mxu0 }
 0x2b4   :  { %v1056_v24 = vadd.f32 %v1517_v23, %v1948_v52  ;;  %v1050_v25 = vpop.f32.mrb[35].mxu0 }
 0x2b5   :  { %v1051_v26 = vadd.f32 %v1948_v52, %v1050_v25 }
 0x2b6   :  { %1138 = vst [vmem:[#allocation2 + $0x98] sm:$0xff] %v1056_v24 }
 0x2b7   :  { %1137 = vst [vmem:[#allocation2 + $0x90] sm:$0xff] %v1051_v26  ;;  %v1520_v27 = vpop.f32.mrb[36].mxu0 }
 0x2b8   :  { %v1066_v28 = vadd.f32 %v1520_v27, %v1948_v52  ;;  %v1060_v29 = vpop.f32.mrb[37].mxu0 }
 0x2b9   :  { %v1061_v30 = vadd.f32 %v1948_v52, %v1060_v29 }
 0x2ba   :  { %1140 = vst [vmem:[#allocation2 + $0xa8] sm:$0xff] %v1066_v28 }
 0x2bb   :  { %1139 = vst [vmem:[#allocation2 + $0xa0] sm:$0xff] %v1061_v30  ;;  %v1523_v31 = vpop.f32.mrb[38].mxu0 }
 0x2bc   :  { %v1076_v32 = vadd.f32 %v1523_v31, %v1948_v52  ;;  %v1070_v33 = vpop.f32.mrb[39].mxu0 }
 0x2bd   :  { %v1071_v34 = vadd.f32 %v1948_v52, %v1070_v33 }
 0x2be   :  { %1142 = vst [vmem:[#allocation2 + $0xb8] sm:$0xff] %v1076_v32 }
 0x2bf   :  { %1141 = vst [vmem:[#allocation2 + $0xb0] sm:$0xff] %v1071_v34  ;;  %v1526_v35 = vpop.f32.mrb[40].mxu0 }
 0x2c0   :  { %v1086_v36 = vadd.f32 %v1526_v35, %v1948_v52  ;;  %v1080_v37 = vpop.f32.mrb[41].mxu0 }
 0x2c1   :  { %v1081_v38 = vadd.f32 %v1948_v52, %v1080_v37 }
 0x2c2   :  { %1144 = vst [vmem:[#allocation2 + $0xc8] sm:$0xff] %v1086_v36 }
 0x2c3   :  { %1143 = vst [vmem:[#allocation2 + $0xc0] sm:$0xff] %v1081_v38  ;;  %v1529_v39 = vpop.f32.mrb[42].mxu0 }
 0x2c4   :  { %v1096_v40 = vadd.f32 %v1529_v39, %v1948_v52  ;;  %v1090_v41 = vpop.f32.mrb[43].mxu0 }
 0x2c5   :  { %v1091_v42 = vadd.f32 %v1948_v52, %v1090_v41 }
 0x2c6   :  { %1146 = vst [vmem:[#allocation2 + $0xd8] sm:$0xff] %v1096_v40 }
 0x2c7   :  { %1145 = vst [vmem:[#allocation2 + $0xd0] sm:$0xff] %v1091_v42  ;;  %v1532_v43 = vpop.f32.mrb[44].mxu0 }
 0x2c8   :  { %v1106_v44 = vadd.f32 %v1532_v43, %v1948_v52  ;;  %v1100_v45 = vpop.f32.mrb[45].mxu0 }
 0x2c9   :  { %v1101_v46 = vadd.f32 %v1948_v52, %v1100_v45 }
 0x2ca   :  { %1148 = vst [vmem:[#allocation2 + $0xe8] sm:$0xff] %v1106_v44 }
 0x2cb   :  { %1147 = vst [vmem:[#allocation2 + $0xe0] sm:$0xff] %v1101_v46  ;;  %v1535_v48 = vpop.f32.mrb[46].mxu0 }
 0x2cc   :  { %v1116_v49 = vadd.f32 %v1535_v48, %v1948_v52  ;;  %v1110_v50 = vpop.f32.mrb[47].mxu0 }
 0x2cd   :  { %v1111_v53 = vadd.f32 %v1948_v52, %v1110_v50 }
 0x2ce   :  { %1150 = vst [vmem:[#allocation2 + $0xf8] sm:$0xff] %v1116_v49 }
 0x2cf   :  { %1149 = vst [vmem:[#allocation2 + $0xf0] sm:$0xff] %v1111_v53 }
 0x2d0   :  { %1572 = shalt.err (!%p1569_p4)
}
 0x2d1   :  { %s1573_s3 = scalar_lea.hbm %s2001_s7, 4096 }
 0x2d2   :  { %p1574_p5 = scmp.ne.s32.totalorder %s2001_s7, %s1573_s3  ;;  %p1577_p6 = scmp.lt.u32.totalorder %s1573_s3, %s2001_s7 }
 0x2d4   :  { %p1579_p7 = pnand %p1577_p6, %p1574_p5 }
 0x2d6   :  { %1582 = shalt.err (!%p1579_p7)
}
 0x2d7   :  { %s1586_s20 = smov 128   ;;  %s1587_s21 = smov 8  }
 0x2d8   :  { %1162 = dma.vmem_to_hbm [thread:$0]  %s1157_s12, 4096, %s2001_s7, [#allocation3], %s1586_s20, %s1586_s20, %s1587_s21  }
 0x2d9   :  { %1583 = dma.done.wait [#allocation3], 4096  }
 0x2da   :  { %1584 = vsyncadd [#allocation3], 4294963200 }
 0x2db   :  { %1166 = vsyncpa [#allocation3], 1 }

</bundles_post_ra>
